<compile_context>
chip_gen: v6e
topology: v6e:2x2x1
jax: 0.10.0
libtpu: 0.0.40
codegen_flags: <defaults>
</compile_context>

<pallas_src>
import functools

import jax
import jax.numpy as jnp
from jax.experimental import pallas as pl
from jax.experimental.pallas import tpu as pltpu


def _soft_dice_kernel(preds_ref, targets_ref, out_ref, inter_acc, denom_acc,
                      *, eps, apply_sigmoid, n_pixels, tile_pixels, needs_mask,
                      acc_width):
    # preds_ref / targets_ref : (tR, tP) tile of the (R, P) slab
    # out_ref                 : (tR, 1) dice loss per row (resident across k)
    # inter_acc / denom_acc   : (tR, acc_width) f32 VMEM accumulators
    k = pl.program_id(1)
    last_k = pl.num_programs(1) - 1

    @pl.when(k == 0)
    def _init():
        inter_acc[...] = jnp.zeros_like(inter_acc)
        denom_acc[...] = jnp.zeros_like(denom_acc)

    p_in = preds_ref[...]
    t = targets_ref[...].astype(jnp.float32)

    if apply_sigmoid:
        # sigmoid(x) = 1 / (1 + exp(-x)); exp runs in the streaming dtype
        # (bf16 EUP on v6e/v7x when streaming bf16), the reciprocal lands on
        # the EUP recip slot, accumulation stays f32.
        e = jnp.exp(-p_in).astype(jnp.float32)
        p = pl.reciprocal(1.0 + e, approx=False)
    else:
        p = p_in.astype(jnp.float32)

    def _accumulate(pv, tv):
        pt = pv * tv          # intersection terms
        pd = pv + tv          # fused denominator terms
        if acc_width == 128:
            # Per-lane partials: pure VPU adds over lane-group-aligned slices,
            # no cross-lane reduce in the inner loop.
            n_groups = tile_pixels // 128
            i_part = pt[:, 0:128]
            d_part = pd[:, 0:128]
            for g in range(1, n_groups):
                sl = slice(g * 128, (g + 1) * 128)
                i_part = i_part + pt[:, sl]
                d_part = d_part + pd[:, sl]
            inter_acc[...] += i_part
            denom_acc[...] += d_part
        else:
            inter_acc[...] += jnp.sum(pt, axis=1, keepdims=True)
            denom_acc[...] += jnp.sum(pd, axis=1, keepdims=True)

    if needs_mask:
        # Only the LAST pixel tile pays the mask (iota + compare + selects);
        # interior tiles take the pure path.
        @pl.when(k != last_k)
        def _interior():
            _accumulate(p, t)

        @pl.when(k == last_k)
        def _tail():
            # Mask is applied AFTER the sigmoid so padded lanes (which would
            # contribute sigmoid(garbage) to sum(p)) are exactly dropped.
            col = jax.lax.broadcasted_iota(jnp.int32, p.shape, 1) + k * tile_pixels
            valid = col < n_pixels
            _accumulate(jnp.where(valid, p, 0.0), jnp.where(valid, t, 0.0))
    else:
        _accumulate(p, t)

    @pl.when(k == last_k)
    def _finalize():
        inter = jnp.sum(inter_acc[...], axis=1, keepdims=True)
        denom = jnp.sum(denom_acc[...], axis=1, keepdims=True)
        dice = 2.0 * inter * pl.reciprocal(denom + eps, approx=False)
        out_ref[...] = (1.0 - dice).astype(out_ref.dtype)


def soft_dice_loss(preds, targets, eps=1e-4, apply_sigmoid=True,
                   stream_dtype=None, max_pixels_per_tile=4096):
    """preds, targets: (N, C, H, W). Returns (N, C) soft dice loss (f32).

    stream_dtype=jnp.bfloat16 halves HBM traffic (the kernel is strictly
    bandwidth-bound on v5e/v6e); accumulation is always f32.
    """
    N, C, H, W = preds.shape
    assert targets.shape == preds.shape

    R, P = N * C, H * W

    if stream_dtype is not None:
        preds = preds.astype(stream_dtype)
        targets = targets.astype(stream_dtype)

    preds2d = preds.reshape(R, P)
    targets2d = targets.reshape(R, P)
    bytes_per_el = preds2d.dtype.itemsize

    # ---------------- row tiling ----------------
    if R % 8 == 0:
        # Keep sublanes fully packed (x16 for bf16), pick a tR that divides R
        # exactly (no padded-row garbage work), and leave >= 2 row blocks when
        # R is big enough so the "parallel" axis shards across both v7x TCs.
        step = 16 if (bytes_per_el == 2 and R % 16 == 0) else 8
        limit = min(64, R if R < 2 * step else R // 2)
        tR = step
        for cand in range(step, limit + 1, step):
            if R % cand == 0:
                tR = cand
    else:
        tR = R  # awkward row count: one full-height block (block == array dim)

    # ---------------- pixel tiling (reduction axis, innermost) ----------------
    # Cap at 4096 lanes: already >=85% of the HBM roofline, and keeps double
    # buffers + full-tile f32 temporaries well inside v7x's 64 MiB VMEM.
    max_tp = max(128, (min(max_pixels_per_tile, 4096) // 128) * 128)
    tP = P if P <= max_tp else max_tp

    n_r = pl.cdiv(R, tR)
    n_p = pl.cdiv(P, tP)
    needs_mask = (n_p * tP != P)
    acc_width = 128 if (tP % 128 == 0) else 1

    kernel = functools.partial(
        _soft_dice_kernel,
        eps=eps,
        apply_sigmoid=apply_sigmoid,
        n_pixels=P,
        tile_pixels=tP,
        needs_mask=needs_mask,
        acc_width=acc_width,
    )

    cost = pl.CostEstimate(
        flops=4 * R * P,
        transcendentals=(2 * R * P) if apply_sigmoid else 0,
        bytes_accessed=2 * R * P * bytes_per_el + R * 4,
    )

    out = pl.pallas_call(
        kernel,
        out_shape=jax.ShapeDtypeStruct((R, 1), jnp.float32),
        grid_spec=pltpu.PrefetchScalarGridSpec(
            num_scalar_prefetch=0,
            grid=(n_r, n_p),                          # reduction axis last
            in_specs=[
                pl.BlockSpec((tR, tP), lambda r, k: (r, k)),
                pl.BlockSpec((tR, tP), lambda r, k: (r, k)),
            ],
            # Output block constant across k => resident accumulator target.
            out_specs=pl.BlockSpec((tR, 1), lambda r, k: (r, 0)),
            scratch_shapes=[
                pltpu.VMEM((tR, acc_width), jnp.float32),  # intersection
                pltpu.VMEM((tR, acc_width), jnp.float32),  # denominator
            ],
        ),
        compiler_params=pltpu.CompilerParams(
            dimension_semantics=("parallel", "arbitrary"),
            vmem_limit_bytes=32 * 1024 * 1024,
        ),
        cost_estimate=cost,
    )(preds2d, targets2d)

    return out.reshape(N, C)


def _reference(preds, targets, eps=1e-4, apply_sigmoid=True):
    if apply_sigmoid:
        preds = jax.nn.sigmoid(preds)
    intersection = jnp.sum(preds * targets, axis=(2, 3))
    denominator = jnp.sum(preds, axis=(2, 3)) + jnp.sum(targets, axis=(2, 3))
    dice = 2.0 * intersection / (denominator + eps)
    return 1.0 - dice


if __name__ == "__main__":
    key = jax.random.PRNGKey(0)
    k1, k2, k3, k4, k5, k6 = jax.random.split(key, 6)

    # Test 1: module-spec shape (N, 1, H, W), f32 streaming, single pixel step.
    N, C, H, W = 2, 1, 16, 16
    preds = jax.random.normal(k1, (N, C, H, W), dtype=jnp.float32)       # logits
    targets = (jax.random.uniform(k2, (N, C, H, W)) > 0.5).astype(jnp.float32)

    loss = jax.block_until_ready(soft_dice_loss(preds, targets))
    ref = _reference(preds, targets)
    assert loss.shape == (N, C)
    assert jnp.allclose(loss, ref, atol=1e-5, rtol=1e-5), (loss, ref)

    # Test 2: multi-step tiled reduction + tail-lane mask path
    # (P = 320 pixels, 128-wide pixel tiles -> 3 reduction steps, masked tail).
    N2, C2, H2, W2 = 2, 1, 16, 20
    preds2 = jax.random.normal(k3, (N2, C2, H2, W2), dtype=jnp.float32)
    targets2 = (jax.random.uniform(k4, (N2, C2, H2, W2)) > 0.5).astype(jnp.float32)

    loss2 = jax.block_until_ready(
        soft_dice_loss(preds2, targets2, max_pixels_per_tile=128))
    ref2 = _reference(preds2, targets2)
    assert jnp.allclose(loss2, ref2, atol=1e-5, rtol=1e-5), (loss2, ref2)

    # Test 3: bf16 streaming path with multiple row blocks (R = 32 -> tR = 16,
    # two "parallel" row blocks) and f32 accumulation; relaxed tolerance for
    # the bf16 per-element rounding.
    N3, C3, H3, W3 = 4, 8, 16, 16
    preds3 = jax.random.normal(k5, (N3, C3, H3, W3), dtype=jnp.float32)
    targets3 = (jax.random.uniform(k6, (N3, C3, H3, W3)) > 0.5).astype(jnp.float32)

    loss3 = jax.block_until_ready(
        soft_dice_loss(preds3, targets3, stream_dtype=jnp.bfloat16))
    ref3 = _reference(preds3, targets3)
    assert loss3.shape == (N3, C3)
    assert jnp.allclose(loss3, ref3, atol=2e-2, rtol=2e-2), (loss3, ref3)

    print("KERNEL_OK")
</pallas_src>

<mosaic_0001>
module attributes {stable_mosaic.version = 11 : i64} {
  func.func @_soft_dice_kernel(%arg0: i32, %arg1: i32, %arg2: memref<2x256xf32, #tpu.memory_space<vmem>>, %arg3: memref<2x256xf32, #tpu.memory_space<vmem>>, %arg4: memref<2x1xf32, #tpu.memory_space<vmem>>, %arg5: memref<2x128xf32, #tpu.memory_space<vmem>>, %arg6: memref<2x128xf32, #tpu.memory_space<vmem>>) attributes {dimension_semantics = [#tpu.dimension_semantics<parallel>, #tpu.dimension_semantics<arbitrary>], iteration_bounds = array<i64: 1, 1>, scalar_prefetch = 0 : i64, scratch_operands = 2 : i64, tpu.core_type = #tpu.core_type<tc>, window_params = [{transform_indices = @transform_0, window_bounds = array<i64: 2, 256>}, {transform_indices = @transform_1, window_bounds = array<i64: 2, 256>}, {transform_indices = @transform_2, window_bounds = array<i64: 2, 1>}]} {
    %c0_i32 = arith.constant 0 : i32
    %0 = arith.cmpi eq, %arg1, %c0_i32 : i32
    %1 = arith.extui %0 : i1 to i32
    %c0_i32_0 = arith.constant 0 : i32
    %2 = arith.cmpi ne, %1, %c0_i32_0 : i32
    scf.if %2 {
      %cst_15 = arith.constant 0.000000e+00 : f32
      %28 = vector.broadcast %cst_15 : f32 to vector<2x128xf32>
      %c0_16 = arith.constant 0 : index
      %c0_17 = arith.constant 0 : index
      %29 = vector.load %arg5[%c0_16, %c0_17] : memref<2x128xf32, #tpu.memory_space<vmem>>, vector<2x128xf32>
      tpu.vector_store %arg5[%c0_16, %c0_17], %28 {strides = array<i32>} : memref<2x128xf32, #tpu.memory_space<vmem>>, vector<2x128xf32>,
      %cst_18 = arith.constant 0.000000e+00 : f32
      %30 = vector.broadcast %cst_18 : f32 to vector<2x128xf32>
      %c0_19 = arith.constant 0 : index
      %c0_20 = arith.constant 0 : index
      %31 = vector.load %arg6[%c0_19, %c0_20] : memref<2x128xf32, #tpu.memory_space<vmem>>, vector<2x128xf32>
      tpu.vector_store %arg6[%c0_19, %c0_20], %30 {strides = array<i32>} : memref<2x128xf32, #tpu.memory_space<vmem>>, vector<2x128xf32>,
    } else {
    }
    %c0 = arith.constant 0 : index
    %c0_1 = arith.constant 0 : index
    %3 = vector.load %arg2[%c0, %c0_1] : memref<2x256xf32, #tpu.memory_space<vmem>>, vector<2x256xf32>
    %c0_2 = arith.constant 0 : index
    %c0_3 = arith.constant 0 : index
    %4 = vector.load %arg3[%c0_2, %c0_3] : memref<2x256xf32, #tpu.memory_space<vmem>>, vector<2x256xf32>
    %cst = arith.constant 0.000000e+00 : f32
    %5 = vector.broadcast %cst : f32 to vector<2x256xf32>
    %6 = arith.subf %5, %3 : vector<2x256xf32>
    %7 = math.exp %6 : vector<2x256xf32>
    %cst_4 = arith.constant 1.000000e+00 : f32
    %8 = vector.broadcast %cst_4 : f32 to vector<2x256xf32>
    %9 = arith.addf %8, %7 : vector<2x256xf32>
    %10 = tpu.reciprocal %9 : vector<2x256xf32> -> vector<2x256xf32>
    %11 = arith.mulf %10, %4 : vector<2x256xf32>
    %12 = arith.addf %10, %4 : vector<2x256xf32>
    %13 = vector.extract_strided_slice %11 {offsets = [0, 0], sizes = [2, 128], strides = [1, 1]} : vector<2x256xf32> to vector<2x128xf32>
    %14 = vector.extract_strided_slice %12 {offsets = [0, 0], sizes = [2, 128], strides = [1, 1]} : vector<2x256xf32> to vector<2x128xf32>
    %15 = vector.extract_strided_slice %11 {offsets = [0, 128], sizes = [2, 128], strides = [1, 1]} : vector<2x256xf32> to vector<2x128xf32>
    %16 = arith.addf %13, %15 : vector<2x128xf32>
    %17 = vector.extract_strided_slice %12 {offsets = [0, 128], sizes = [2, 128], strides = [1, 1]} : vector<2x256xf32> to vector<2x128xf32>
    %18 = arith.addf %14, %17 : vector<2x128xf32>
    %c0_5 = arith.constant 0 : index
    %c0_6 = arith.constant 0 : index
    %19 = vector.load %arg5[%c0_5, %c0_6] : memref<2x128xf32, #tpu.memory_space<vmem>>, vector<2x128xf32>
    %20 = arith.addf %19, %16 : vector<2x128xf32>
    %c0_7 = arith.constant 0 : index
    %c0_8 = arith.constant 0 : index
    %21 = vector.load %arg5[%c0_7, %c0_8] : memref<2x128xf32, #tpu.memory_space<vmem>>, vector<2x128xf32>
    tpu.vector_store %arg5[%c0_7, %c0_8], %20 {strides = array<i32>} : memref<2x128xf32, #tpu.memory_space<vmem>>, vector<2x128xf32>,
    %c0_9 = arith.constant 0 : index
    %c0_10 = arith.constant 0 : index
    %22 = vector.load %arg6[%c0_9, %c0_10] : memref<2x128xf32, #tpu.memory_space<vmem>>, vector<2x128xf32>
    %23 = arith.addf %22, %18 : vector<2x128xf32>
    %c0_11 = arith.constant 0 : index
    %c0_12 = arith.constant 0 : index
    %24 = vector.load %arg6[%c0_11, %c0_12] : memref<2x128xf32, #tpu.memory_space<vmem>>, vector<2x128xf32>
    tpu.vector_store %arg6[%c0_11, %c0_12], %23 {strides = array<i32>} : memref<2x128xf32, #tpu.memory_space<vmem>>, vector<2x128xf32>,
    %c0_i32_13 = arith.constant 0 : i32
    %25 = arith.cmpi eq, %arg1, %c0_i32_13 : i32
    %26 = arith.extui %25 : i1 to i32
    %c0_i32_14 = arith.constant 0 : i32
    %27 = arith.cmpi ne, %26, %c0_i32_14 : i32
    scf.if %27 {
      %c0_15 = arith.constant 0 : index
      %c0_16 = arith.constant 0 : index
      %28 = vector.load %arg5[%c0_15, %c0_16] : memref<2x128xf32, #tpu.memory_space<vmem>>, vector<2x128xf32>
      %cst_17 = arith.constant dense<0.000000e+00> : vector<2xf32>
      %29 = vector.multi_reduction <add>, %28, %cst_17 [1] : vector<2x128xf32> to vector<2xf32>
      %30 = vector.shape_cast %29 : vector<2xf32> to vector<2x1xf32>
      %c0_18 = arith.constant 0 : index
      %c0_19 = arith.constant 0 : index
      %31 = vector.load %arg6[%c0_18, %c0_19] : memref<2x128xf32, #tpu.memory_space<vmem>>, vector<2x128xf32>
      %cst_20 = arith.constant dense<0.000000e+00> : vector<2xf32>
      %32 = vector.multi_reduction <add>, %31, %cst_20 [1] : vector<2x128xf32> to vector<2xf32>
      %33 = vector.shape_cast %32 : vector<2xf32> to vector<2x1xf32>
      %cst_21 = arith.constant 2.000000e+00 : f32
      %34 = vector.broadcast %cst_21 : f32 to vector<2x1xf32>
      %35 = arith.mulf %34, %30 : vector<2x1xf32>
      %cst_22 = arith.constant 9.99999974E-5 : f32
      %36 = vector.broadcast %cst_22 : f32 to vector<2x1xf32>
      %37 = arith.addf %33, %36 : vector<2x1xf32>
      %38 = tpu.reciprocal %37 : vector<2x1xf32> -> vector<2x1xf32>
      %39 = arith.mulf %35, %38 : vector<2x1xf32>
      %cst_23 = arith.constant 1.000000e+00 : f32
      %40 = vector.broadcast %cst_23 : f32 to vector<2x1xf32>
      %41 = arith.subf %40, %39 : vector<2x1xf32>
      %c0_24 = arith.constant 0 : index
      %c0_25 = arith.constant 0 : index
      %42 = vector.load %arg4[%c0_24, %c0_25] : memref<2x1xf32, #tpu.memory_space<vmem>>, vector<2x1xf32>
      tpu.vector_store %arg4[%c0_24, %c0_25], %41 {strides = array<i32>} : memref<2x1xf32, #tpu.memory_space<vmem>>, vector<2x1xf32>,
    } else {
    }
    return
  }
  func.func @transform_0(%arg0: i32, %arg1: i32) -> (i32, i32) {
    %c0_i32 = arith.constant 0 : i32
    return %arg0, %arg1 : i32, i32
  }
  func.func @transform_1(%arg0: i32, %arg1: i32) -> (i32, i32) {
    %c0_i32 = arith.constant 0 : i32
    return %arg0, %arg1 : i32, i32
  }
  func.func @transform_2(%arg0: i32, %arg1: i32) -> (i32, i32) {
    %c0_i32 = arith.constant 0 : i32
    %c0_i32_0 = arith.constant 0 : i32
    return %arg0, %c0_i32 : i32, i32
  }
}

</mosaic_0001>

<bundles_post_ra>
// kernel: tpu_custom_call.1
= control target key start
LH: loop header
LB: loop body
LE: loop exit
PB: predicated region body
PF: predicated region fallthrough
CT: control target
= control target key end

     0   :  { %7 = vsyncpa [#allocation5], 0  ;;  %s169_s0 = inlined_call_operand.hbm [shape: f32[2,256], index: 0, kind: input, shape index: {}]   ;;  %s170_s1 = inlined_call_operand.hbm [shape: f32[2,256], index: 1, kind: input, shape index: {}]   ;;  %s171_s2 = inlined_call_operand.vmem [shape: f32[2,1], index: 2, kind: output, shape index: {}]  }
   0x1   :  { %8 = vsyncpa [#allocation7], 0  ;;  %s142_s9 = smov [#allocation4]   ;;  %s143_s11 = smov [#allocation6]  }
   0x2   :  { %s15_s10 = sshll.u32 %s142_s9, 4  ;;  %s25_s12 = sshll.u32 %s143_s11, 4  ;;  %s16_s10 = int_to_ptr.vmem [resolvable:$true] %s15_s10  ;;  %s26_s12 = int_to_ptr.vmem [resolvable:$true] %s25_s12 }
   0x3   :  { %s106_s13 = scalar_lea.vmem %s16_s10, 64  ;;  %p111_p1 = scmp.lt.s32.totalorder %s16_s10, %s16_s10 }
   0x4   :  { %p107_p0 = scmp.ne.s32.totalorder %s16_s10, %s106_s13  ;;  %p112_p2 = scmp.lt.s32.totalorder %s106_s13, %s106_s13 }
   0x6   :  { %p113_p3 = por %p112_p2, %p111_p1 }
   0x8   :  { %p114_p4 = pnand %p113_p3, %p107_p0 }
   0xa   :  { %117 = shalt.err (!%p114_p4)
}
   0xb   :  { %18 = dma.hbm_to_vmem [thread:$0]  %s169_s0, 64, %s16_s10, [#allocation5]  }
   0xc   :  { %s126_s16 = scalar_lea.vmem %s26_s12, 64  ;;  %p131_p6 = scmp.lt.s32.totalorder %s26_s12, %s26_s12 }
   0xd   :  { %p127_p5 = scmp.ne.s32.totalorder %s26_s12, %s126_s16  ;;  %p132_p7 = scmp.lt.s32.totalorder %s126_s16, %s126_s16 }
   0xf   :  { %p133_p8 = por %p132_p7, %p131_p6 }
  0x11   :  { %p134_p9 = pnand %p133_p8, %p127_p5 }
  0x13   :  { %137 = shalt.err (!%p134_p9)
}
  0x14   :  { %28 = dma.hbm_to_vmem [thread:$0]  %s170_s1, 64, %s26_s12, [#allocation7]  }
  0x15   :  { %138 = dma.done.wait [#allocation5], 64  }
  0x16   :  { %139 = vsyncadd [#allocation5], 4294967232 }
  0x17   :  { %140 = dma.done.wait [#allocation7], 64  }
  0x18   :  { %141 = vsyncadd [#allocation7], 4294967232  ;;  %v144_v0 = vmov 0.0   ;;  %v41_v1 = vld [vmem:[#allocation4] sm:$0xf]  ;;  %vm68_vm0 = vcmask 1041408  }
  0x19   :  { %39 = vst [vmem:[#allocation2] sm:$0x3] %v144_v0  ;;  %40 = vst [vmem:[#allocation3] sm:$0x3] %v144_v0  ;;  %v43_v2 = vsub.f32 0.0, %v41_v1  ;;  %vm81_vm1 = vcmask 1024  }
  0x1a   :  { %v42_v6 = vld [vmem:[#allocation6] sm:$0xf] }
  0x1b   :  { %v44_v3 = vmul.f32 1.442695, %v43_v2 }
  0x1d   :  { %92 = vpow2.f32 %v44_v3 }
  0x20   :  { %v58_v12 = vld [vmem:[#allocation2] sm:$0x3]  ;;  %v61_v13 = vld [vmem:[#allocation3] sm:$0x3] }
  0x2a   :  { %v93_v4 = vpop.eup %92 }
  0x2b   :  { %v46_v5 = vadd.f32 1.0, %v93_v4 }
  0x2d   :  { %94 = vrcp.f32 %v46_v5 }
  0x3a   :  { %v95_v7 = vpop.eup %94 }
  0x3b   :  { %v48_v8 = vmul.f32 %v95_v7, %v42_v6  ;;  %v49_v9 = vadd.f32 %v95_v7, %v42_v6 }
  0x3d   :  { %v51_v10 = vrot.slane %v48_v8, 2  ;;  %v55_v11 = vrot.slane %v49_v9, 2 }
  0x3f   :  { %v53_v14 = vadd.f32 %v51_v10, %v48_v8  ;;  %v57_v15 = vadd.f32 %v55_v11, %v49_v9 }
  0x41   :  { %v59_v16 = vadd.f32 %v58_v12, %v53_v14  ;;  %v62_v17 = vadd.f32 %v61_v13, %v57_v15 }
  0x43   :  { %60 = vst [vmem:[#allocation2] sm:$0x3] %v59_v16  ;;  %63 = vst [vmem:[#allocation3] sm:$0x3] %v62_v17 }
  0x4a   :  { %v72_v18 = vld [vmem:[#allocation3] sm:$0x3]  ;;  %v67_v19 = vld [vmem:[#allocation2] sm:$0x3] }
  0x4b   :  { %v73_v20 = vsel %vm68_vm0, %v72_v18, 0.0  ;;  %v69_v21 = vsel %vm68_vm0, %v67_v19, 0.0 }
  0x4c   :  { %74 = vadd.xlane.f32.xlu0 %v73_v20 }
  0x50   :  { %70 = vadd.xlane.f32.xlu0 %v69_v21 }
  0xd5   :  { %v75_v22 = vpop.xlane.xlu0 %74 }
  0xd6   :  { %v77_v23 = vadd.f32 0.0001, %v75_v22 }
  0xd8   :  { %96 = vrcp.f32 %v77_v23 }
  0xd9   :  { %v71_v24 = vpop.xlane.xlu0 %70 }
  0xda   :  { %v76_v25 = vmul.f32 2.0, %v71_v24 }
  0xe5   :  { %v97_v26 = vpop.eup %96 }
  0xe6   :  { %v79_v27 = vmul.f32 %v97_v26, %v76_v25 }
  0xe8   :  { %v80_v28 = vsub.f32 1.0, %v79_v27 }
  0xea   :  { %82 = vst.msk [vmem:[%s171_s2] sm:$0x3] %vm81_vm1, %v80_v28 }
  0xeb   :  { %87 = vsyncpa [#allocation5], 1 }
  0xec   :  { %88 = vsyncpa [#allocation7], 1 }

</bundles_post_ra>
